<compile_context>
chip_gen: v5e
topology: v5e:2x2
jax: 0.10.0
libtpu: 0.0.40
codegen_flags: <defaults>
</compile_context>

<pallas_src>
import functools
import math

import jax
import jax.numpy as jnp
from jax import lax
from jax.experimental import pallas as pl
from jax.experimental.pallas import tpu as pltpu

LANE = 128
ROW_ALIGN = 16           # sublane alignment valid for both f32 and bf16 blocks
TARGET_ROW_TILE = 8192   # 8192 x 128 f32 = 4 MiB per input block
CHUNK_ROWS = 512         # inner sub-slab so elementwise math fuses with accumulate
MIN_KERNEL_ROWS = 16     # below this, plain jnp beats a kernel launch
VMEM_LIMIT_BYTES = 40 * 1024 * 1024   # < v7x's 64 MiB physical VMEM per TC


def _cdiv(a, b):
    return -(-a // b)


def _combined_loss_kernel(p_ref, t_ref, out_ref, *, w_bce, w_mse,
                          rows_valid, row_tile, chunk, num_tiles, needs_mask):
    i = pl.program_id(0)

    @pl.when(i == 0)
    def _():
        out_ref[...] = jnp.zeros_like(out_ref)

    def tile_sum(masked):
        acc = jnp.zeros((8, LANE), jnp.float32)
        for j in range(row_tile // chunk):           # static, unrolled sub-slabs
            rs = pl.ds(j * chunk, chunk)             # static slice -> free view
            x = p_ref[rs, :].astype(jnp.float32)
            t = t_ref[rs, :].astype(jnp.float32)
            # BCEWithLogits (numerically stable): max(x,0) - x*t + log1p(exp(-|x|))
            bce = jnp.maximum(x, 0.0) - x * t + jnp.log1p(jnp.exp(-jnp.abs(x)))
            mse = (x - t) * (x - t)
            combined = w_bce * bce + w_mse * mse     # fuse -> single reduction operand
            if masked:
                # Only emitted for the (single) ragged last tile.
                row_ids = (i * row_tile + j * chunk
                           + lax.broadcasted_iota(jnp.int32, (chunk, LANE), 0))
                combined = jnp.where(row_ids < rows_valid, combined, 0.0)
            # Sublane-aligned partial reduction onto an (8, LANE) accumulator:
            # pure VPU adds; the cross-lane reduce happens once in the wrapper.
            acc = acc + jnp.sum(combined.reshape(chunk // 8, 8, LANE), axis=0)
        return acc

    if needs_mask:
        @pl.when(i < num_tiles - 1)
        def _():
            out_ref[...] += tile_sum(False)          # steady state: no mask cost

        @pl.when(i == num_tiles - 1)
        def _():
            out_ref[...] += tile_sum(True)           # ragged last tile: masked
    else:
        out_ref[...] += tile_sum(False)


def _elementwise_loss(x, t, w_bce, w_mse):
    x = x.astype(jnp.float32)
    t = t.astype(jnp.float32)
    bce = jnp.maximum(x, 0.0) - x * t + jnp.log1p(jnp.exp(-jnp.abs(x)))
    mse = (x - t) * (x - t)
    return w_bce * bce + w_mse * mse


def combined_loss(preds, targets, weights=(0.7, 0.3)):
    """preds, targets: same shape (e.g. NCHW f32/bf16). Returns scalar f32:
       weights[0] * BCEWithLogits(mean) + weights[1] * MSE(mean)."""
    assert preds.shape == targets.shape
    w_bce, w_mse = float(weights[0]), float(weights[1])
    n_elems = int(preds.size)

    p_flat = preds.reshape(-1)       # free reshape; keeps storage dtype
    t_flat = targets.reshape(-1)

    rows_full = n_elems // LANE
    rem = n_elems - rows_full * LANE

    if rows_full < MIN_KERNEL_ROWS:
        # Tiny inputs: a kernel launch isn't worth it; plain jnp is exact.
        return jnp.sum(_elementwise_loss(p_flat, t_flat, w_bce, w_mse)) / n_elems

    # Row tile: multiple of 16, never larger than the array's row count,
    # capped at TARGET_ROW_TILE (4 MiB f32 blocks).
    row_tile = min(TARGET_ROW_TILE, (rows_full // ROW_ALIGN) * ROW_ALIGN)
    chunk = math.gcd(row_tile, CHUNK_ROWS)       # divides row_tile, multiple of 16
    num_tiles = _cdiv(rows_full, row_tile)
    needs_mask = (rows_full % row_tile) != 0     # only the last tile is ragged

    n_main = rows_full * LANE
    if rem:
        # Ragged lane tail (<128 elems) in plain jnp -- tiny.  The prefix slice
        # may copy when numel isn't a multiple of 128; still far cheaper than
        # the previous full jnp.pad copy + per-tile masking.
        tail_sum = jnp.sum(_elementwise_loss(p_flat[n_main:], t_flat[n_main:],
                                             w_bce, w_mse))
        p_main, t_main = p_flat[:n_main], t_flat[:n_main]
    else:
        tail_sum = jnp.float32(0.0)
        p_main, t_main = p_flat, t_flat

    p2 = p_main.reshape(rows_full, LANE)
    t2 = t_main.reshape(rows_full, LANE)

    kernel = functools.partial(
        _combined_loss_kernel,
        w_bce=w_bce, w_mse=w_mse,
        rows_valid=int(rows_full), row_tile=int(row_tile), chunk=int(chunk),
        num_tiles=int(num_tiles), needs_mask=bool(needs_mask))

    # TODO(synk): on v7x a 2-TensorCore split (pltpu.CORE_PARALLEL leading grid
    # axis) could ~2x this HBM-bound loop; kept single-core for portability.
    partial_slab = pl.pallas_call(
        kernel,
        out_shape=jax.ShapeDtypeStruct((8, LANE), jnp.float32),
        grid_spec=pltpu.PrefetchScalarGridSpec(
            num_scalar_prefetch=0,
            grid=(num_tiles,),
            in_specs=[
                pl.BlockSpec((row_tile, LANE), lambda i: (i, 0)),
                pl.BlockSpec((row_tile, LANE), lambda i: (i, 0)),
            ],
            # Constant block index across the reduction axis -> out_ref stays
            # resident in VMEM and is written back to HBM once at the end.
            out_specs=pl.BlockSpec((8, LANE), lambda i: (0, 0)),
        ),
        compiler_params=pltpu.CompilerParams(
            dimension_semantics=("arbitrary",),
            vmem_limit_bytes=VMEM_LIMIT_BYTES,
        ),
    )(p2, t2)

    # Final tiny cross-lane reduce + lane-tail correction + mean normalization.
    return (jnp.sum(partial_slab) + tail_sum) / n_elems


def _reference(preds, targets, weights=(0.7, 0.3)):
    x = preds.astype(jnp.float32)
    t = targets.astype(jnp.float32)
    bce = jnp.mean(jnp.maximum(x, 0.0) - x * t + jnp.log1p(jnp.exp(-jnp.abs(x))))
    mse = jnp.mean((x - t) ** 2)
    return weights[0] * bce + weights[1] * mse


if __name__ == "__main__":
    key = jax.random.PRNGKey(0)
    kp, kt = jax.random.split(key)
    B, C, H, W = 2, 4, 16, 16
    preds = jax.random.normal(kp, (B, C, H, W), dtype=jnp.float32)
    # binary-ish targets, as typical for BCE-with-logits on CXR labels/masks
    targets = (jax.random.uniform(kt, (B, C, H, W)) > 0.5).astype(jnp.float32)

    loss = jax.block_until_ready(combined_loss(preds, targets))
    ref = jax.block_until_ready(_reference(preds, targets))
    assert jnp.allclose(loss, ref, rtol=1e-5, atol=1e-5), (loss, ref)

    # Also exercise the general-shape path: ragged last row tile + lane tail.
    kp2, kt2 = jax.random.split(jax.random.PRNGKey(1))
    shape2 = (2, 4, 17, 17)
    preds2 = jax.random.normal(kp2, shape2, dtype=jnp.float32)
    targets2 = (jax.random.uniform(kt2, shape2) > 0.5).astype(jnp.float32)
    loss2 = jax.block_until_ready(combined_loss(preds2, targets2))
    ref2 = jax.block_until_ready(_reference(preds2, targets2))
    assert jnp.allclose(loss2, ref2, rtol=1e-5, atol=1e-5), (loss2, ref2)

    print("KERNEL_OK")
</pallas_src>

<mosaic_0001>
module attributes {stable_mosaic.version = 11 : i64} {
  func.func @_combined_loss_kernel(%arg0: i32, %arg1: memref<16x128xf32, #tpu.memory_space<vmem>>, %arg2: memref<16x128xf32, #tpu.memory_space<vmem>>, %arg3: memref<8x128xf32, #tpu.memory_space<vmem>>) attributes {dimension_semantics = [#tpu.dimension_semantics<arbitrary>], iteration_bounds = array<i64: 1>, scalar_prefetch = 0 : i64, scratch_operands = 0 : i64, tpu.core_type = #tpu.core_type<tc>, window_params = [{transform_indices = @transform_0, window_bounds = array<i64: 16, 128>}, {transform_indices = @transform_1, window_bounds = array<i64: 16, 128>}, {pipeline_mode = #tpu.pipeline_mode<synchronous>, transform_indices = @transform_2, window_bounds = array<i64: 8, 128>}]} {
    %c0_i32 = arith.constant 0 : i32
    %0 = arith.cmpi eq, %arg0, %c0_i32 : i32
    %1 = arith.extui %0 : i1 to i32
    %c0_i32_0 = arith.constant 0 : i32
    %2 = arith.cmpi ne, %1, %c0_i32_0 : i32
    scf.if %2 {
      %cst_13 = arith.constant 0.000000e+00 : f32
      %30 = vector.broadcast %cst_13 : f32 to vector<8x128xf32>
      %c0_14 = arith.constant 0 : index
      %c0_15 = arith.constant 0 : index
      %31 = vector.load %arg3[%c0_14, %c0_15] : memref<8x128xf32, #tpu.memory_space<vmem>>, vector<8x128xf32>
      tpu.vector_store %arg3[%c0_14, %c0_15], %30 {strides = array<i32>} : memref<8x128xf32, #tpu.memory_space<vmem>>, vector<8x128xf32>,
    } else {
    }
    %c0 = arith.constant 0 : index
    %c0_1 = arith.constant 0 : index
    %3 = vector.load %arg3[%c0, %c0_1] : memref<8x128xf32, #tpu.memory_space<vmem>>, vector<8x128xf32>
    %cst = arith.constant 0.000000e+00 : f32
    %4 = vector.broadcast %cst : f32 to vector<8x128xf32>
    %c0_2 = arith.constant 0 : index
    %c0_3 = arith.constant 0 : index
    %5 = vector.load %arg1[%c0_2, %c0_3] : memref<16x128xf32, #tpu.memory_space<vmem>>, vector<16x128xf32>
    %c0_4 = arith.constant 0 : index
    %c0_5 = arith.constant 0 : index
    %6 = vector.load %arg2[%c0_4, %c0_5] : memref<16x128xf32, #tpu.memory_space<vmem>>, vector<16x128xf32>
    %cst_6 = arith.constant 0.000000e+00 : f32
    %7 = vector.broadcast %cst_6 : f32 to vector<16x128xf32>
    %8 = arith.maximumf %5, %7 : vector<16x128xf32>
    %9 = arith.mulf %5, %6 : vector<16x128xf32>
    %10 = arith.subf %8, %9 : vector<16x128xf32>
    %11 = math.absf %5 : vector<16x128xf32>
    %cst_7 = arith.constant 0.000000e+00 : f32
    %12 = vector.broadcast %cst_7 : f32 to vector<16x128xf32>
    %13 = arith.subf %12, %11 : vector<16x128xf32>
    %14 = math.exp %13 : vector<16x128xf32>
    %15 = math.log1p %14 : vector<16x128xf32>
    %16 = arith.addf %10, %15 : vector<16x128xf32>
    %17 = arith.subf %5, %6 : vector<16x128xf32>
    %18 = arith.subf %5, %6 : vector<16x128xf32>
    %19 = arith.mulf %17, %18 : vector<16x128xf32>
    %cst_8 = arith.constant 0.699999988 : f32
    %20 = vector.broadcast %cst_8 : f32 to vector<16x128xf32>
    %21 = arith.mulf %20, %16 : vector<16x128xf32>
    %cst_9 = arith.constant 3.000000e-01 : f32
    %22 = vector.broadcast %cst_9 : f32 to vector<16x128xf32>
    %23 = arith.mulf %22, %19 : vector<16x128xf32>
    %24 = arith.addf %21, %23 : vector<16x128xf32>
    %25 = vector.shape_cast %24 : vector<16x128xf32> to vector<2x8x128xf32>
    %cst_10 = arith.constant dense<0.000000e+00> : vector<8x128xf32>
    %26 = vector.multi_reduction <add>, %25, %cst_10 [0] : vector<2x8x128xf32> to vector<8x128xf32>
    %27 = arith.addf %4, %26 : vector<8x128xf32>
    %28 = arith.addf %3, %27 : vector<8x128xf32>
    %c0_11 = arith.constant 0 : index
    %c0_12 = arith.constant 0 : index
    %29 = vector.load %arg3[%c0_11, %c0_12] : memref<8x128xf32, #tpu.memory_space<vmem>>, vector<8x128xf32>
    tpu.vector_store %arg3[%c0_11, %c0_12], %28 {strides = array<i32>} : memref<8x128xf32, #tpu.memory_space<vmem>>, vector<8x128xf32>,
    return
  }
  func.func @transform_0(%arg0: i32) -> (i32, i32) {
    %c0_i32 = arith.constant 0 : i32
    %c0_i32_0 = arith.constant 0 : i32
    return %arg0, %c0_i32 : i32, i32
  }
  func.func @transform_1(%arg0: i32) -> (i32, i32) {
    %c0_i32 = arith.constant 0 : i32
    %c0_i32_0 = arith.constant 0 : i32
    return %arg0, %c0_i32 : i32, i32
  }
  func.func @transform_2(%arg0: i32) -> (i32, i32) {
    %c0_i32 = arith.constant 0 : i32
    %c0_i32_0 = arith.constant 0 : i32
    %c0_i32_1 = arith.constant 0 : i32
    return %c0_i32, %c0_i32_0 : i32, i32
  }
}

</mosaic_0001>

<bundles_post_ra>
// kernel: tpu_custom_call.1
= control target key start
LH: loop header
LB: loop body
LE: loop exit
PB: predicated region body
PF: predicated region fallthrough
CT: control target
= control target key end

     0   :  { %7 = vsyncpa [#allocation3], 0  ;;  %s241_s0 = inlined_call_operand.hbm [shape: f32[16,128], index: 0, kind: input, shape index: {}]   ;;  %s242_s1 = inlined_call_operand.hbm [shape: f32[16,128], index: 1, kind: input, shape index: {}]   ;;  %s243_s2 = inlined_call_operand.hbm [shape: f32[8,128], index: 2, kind: output, shape index: {}]  }
   0x1   :  { %8 = vsyncpa [#allocation6], 0 }
   0x2   :  { %9 = vsyncpa [#allocation4], 0  ;;  %s14_s11 = sshll.u32 %s241_s0, 4  ;;  %s212_s12 = smov [#allocation2]   ;;  %s15_s11 = int_to_ptr.hbm [resolvable:$true] %s14_s11 }
   0x3   :  { %s16_s13 = sshll.u32 %s212_s12, 4  ;;  %s27_s16 = sshll.u32 %s242_s1, 4  ;;  %s17_s13 = int_to_ptr.vmem [resolvable:$true] %s16_s13  ;;  %s28_s16 = int_to_ptr.hbm [resolvable:$true] %s27_s16 }
   0x4   :  { %s213_s17 = smov 128   ;;  %s214_s18 = smov 8  }
   0x5   :  { %22 = dma.hbm_to_vmem [thread:$0]  %s15_s11, 256, %s17_s13, [#allocation3], %s213_s17, %s213_s17, %s214_s18  }
   0x6   :  { %s215_s19 = smov [#allocation5]  }
   0x7   :  { %s29_s20 = sshll.u32 %s215_s19, 4  ;;  %s30_s20 = int_to_ptr.vmem [resolvable:$true] %s29_s20 }
   0x8   :  { %35 = dma.hbm_to_vmem [thread:$0]  %s28_s16, 256, %s30_s20, [#allocation6], %s213_s17, %s213_s17, %s214_s18  }
   0x9   :  { %206 = dma.done.wait [#allocation3], 256  }
   0xa   :  { %207 = vsyncadd [#allocation3], 4294967040 }
   0xb   :  { %208 = dma.done.wait [#allocation6], 256  }
   0xc   :  { %209 = vsyncadd [#allocation6], 4294967040  ;;  %v50_v0 = vld [vmem:[#allocation2] sm:$0xff]  ;;  %v51_v1 = vld [vmem:[#allocation2 + $0x8] sm:$0xff]  ;;  %s216_s0 = smov [#allocation7]   ;;  %s109_s23 = sshll.u32 %s243_s2, 4  ;;  %s110_s23 = int_to_ptr.hbm [resolvable:$true] %s109_s23 }
   0xd   :  { %v60_v2 = vand.u32 2147483647, %v50_v0  ;;  %v61_v3 = vand.u32 2147483647, %v51_v1  ;;  %v52_v12 = vld [vmem:[#allocation5] sm:$0xff]  ;;  %v53_v15 = vld [vmem:[#allocation5 + $0x8] sm:$0xff] }
   0xe   :  { %v54_v16 = vmax.f32 %v50_v0, 0.0  ;;  %v56_v18 = vmul.f32 %v52_v12, %v50_v0  ;;  %v88_v21 = vsub.f32 %v50_v0, %v52_v12  ;;  %v55_v22 = vmax.f32 %v51_v1, 0.0  ;;  %s107_s1 = sshll.u32 %s216_s0, 4  ;;  %s108_s1 = int_to_ptr.vmem [resolvable:$true] %s107_s1 }
   0xf   :  { %v62_v4 = vsub.f32 0.0, %v60_v2  ;;  %v63_v5 = vsub.f32 0.0, %v61_v3  ;;  %v57_v23 = vmul.f32 %v53_v15, %v51_v1  ;;  %v89_v25 = vsub.f32 %v51_v1, %v53_v15 }
  0x10   :  { %v58_v28 = vsub.f32 %v54_v16, %v56_v18  ;;  %v90_v30 = vmul.f32 %v88_v21, %v88_v21 }
  0x11   :  { %v64_v6 = vmul.f32 1.442695, %v62_v4  ;;  %v66_v7 = vmul.f32 1.442695, %v63_v5  ;;  %v59_v32 = vsub.f32 %v55_v22, %v57_v23  ;;  %v91_v34 = vmul.f32 %v89_v25, %v89_v25 }
  0x12   :  { %v94_v39 = vmul.f32 0.3, %v90_v30 }
  0x13   :  { %126 = vpow2.f32 %v64_v6  ;;  %v95_v41 = vmul.f32 0.3, %v91_v34 }
  0x14   :  { %128 = vpow2.f32 %v66_v7 }
  0x19   :  { %v127_v8 = vpop.eup %126 }
  0x1a   :  { %v129_v9 = vpop.eup %128  ;;  %v68_v10 = vadd.f32 1.0, %v127_v8  ;;  %v71_v11 = vmul.f32 -0.5, %v127_v8  ;;  %v74_v19 = vand.u32 2147483647, %v127_v8 }
  0x1b   :  { %v77_v13 = vadd.f32 1.0, %v129_v9  ;;  %v80_v14 = vmul.f32 -0.5, %v129_v9  ;;  %v83_v24 = vand.u32 2147483647, %v129_v9 }
  0x1c   :  { %130 = vlog2.f32 %v68_v10  ;;  %v72_v17 = vadd.f32 1.0, %v71_v11  ;;  %vm75_vm0 = vcmp.lt.f32.partialorder %v74_v19, 0.0004427343 }
  0x1d   :  { %132 = vlog2.f32 %v77_v13  ;;  %v81_v20 = vadd.f32 1.0, %v80_v14  ;;  %vm84_vm1 = vcmp.lt.f32.partialorder %v83_v24, 0.0004427343 }
  0x1e   :  { %v73_v26 = vmul.f32 %v127_v8, %v72_v17 }
  0x1f   :  { %v82_v29 = vmul.f32 %v129_v9, %v81_v20 }
  0x22   :  { %v131_v27 = vpop.eup %130 }
  0x23   :  { %v133_v31 = vpop.eup %132  ;;  %v70_v33 = vmul.f32 0.6931472, %v131_v27 }
  0x24   :  { %v79_v35 = vmul.f32 0.6931472, %v133_v31 }
  0x25   :  { %v76_v36 = vsel %vm75_vm0, %v73_v26, %v70_v33 }
  0x26   :  { %v85_v37 = vsel %vm84_vm1, %v82_v29, %v79_v35  ;;  %v86_v38 = vadd.f32 %v76_v36, %v58_v28 }
  0x27   :  { %v87_v40 = vadd.f32 %v85_v37, %v59_v32 }
  0x28   :  { %v92_v42 = vmul.f32 0.7, %v86_v38 }
  0x29   :  { %v93_v43 = vmul.f32 0.7, %v87_v40 }
  0x2a   :  { %v96_v44 = vadd.f32 %v94_v39, %v92_v42 }
  0x2b   :  { %v97_v45 = vadd.f32 %v95_v41, %v93_v43 }
  0x2d   :  { %v98_v46 = vadd.f32 %v97_v45, %v96_v44 }
  0x2f   :  { %101 = vst [vmem:[#allocation7] sm:$0xff] %v98_v46 }
  0x30   :  { %112 = dma.vmem_to_hbm [thread:$0]  %s108_s1, 128, %s110_s23, [#allocation4]  }
  0x31   :  { %210 = dma.done.wait [#allocation4], 128  }
  0x32   :  { %211 = vsyncadd [#allocation4], 4294967168 }
  0x33   :  { %117 = vsyncpa [#allocation3], 1 }
  0x34   :  { %118 = vsyncpa [#allocation6], 1 }
  0x35   :  { %119 = vsyncpa [#allocation4], 1 }

</bundles_post_ra>
